<compile_context>
chip_gen: v5e
topology: v5e:2x2
jax: 0.10.0
libtpu: 0.0.40
codegen_flags: <defaults>
</compile_context>

<pallas_src>
import jax
import jax.numpy as jnp
from jax.experimental import pallas as pl
from jax.experimental.pallas import tpu as pltpu


def _mean_pool_kernel(x_ref, mask_ref, o_ref, cnt_ref):
    # x_ref:    (Bt, St, Ht) activation tile, native dtype (bf16/f32), VMEM
    # mask_ref: (Bt, St)     attention-mask tile (int/bool/float), VMEM
    # o_ref:    (Bt, Ht)     f32 output tile; VMEM-resident accumulator over S
    # cnt_ref:  (Bt, 1)      f32 scratch; running mask count (per batch row)
    k = pl.program_id(2)

    @pl.when(k == 0)
    def _():
        o_ref[...] = jnp.zeros_like(o_ref)
        cnt_ref[...] = jnp.zeros_like(cnt_ref)

    x = x_ref[...].astype(jnp.float32)          # cast in-register (load stays narrow)
    m = mask_ref[...].astype(jnp.float32)       # (Bt, St)

    o_ref[...] += jnp.sum(x * m[:, :, None], axis=1)        # partial masked sum
    cnt_ref[...] += jnp.sum(m, axis=1, keepdims=True)        # partial mask count

    @pl.when(k == pl.num_programs(2) - 1)
    def _():
        denom = jnp.maximum(cnt_ref[...], 1e-9)              # torch.clamp(min=1e-9)
        o_ref[...] = o_ref[...] / denom                       # broadcast (Bt,1)->(Bt,Ht)


def _pick_tile(dim: int, preferred: int, align: int) -> int:
    """Largest multiple of `align` that divides `dim` and is <= preferred, else the full dim."""
    if dim <= preferred:
        return dim
    t = (preferred // align) * align
    while t >= align:
        if dim % t == 0:
            return t
        t -= align
    return dim


def mean_pooling(last_hidden_state: jax.Array, attention_mask: jax.Array,
                 *, st_pref: int = 512, ht_pref: int = 512) -> jax.Array:
    """last_hidden_state: (B, S, H) in its native dtype; attention_mask: (B, S).

    Returns (B, H) float32 masked mean over the sequence axis.
    """
    B, S, H = last_hidden_state.shape
    x = last_hidden_state            # no host-side up-cast: keep bf16/f32 as-is
    mask = attention_mask            # (B, S); cast happens inside the kernel

    Bt = 8 if (B > 8 and B % 8 == 0) else B
    St = _pick_tile(S, st_pref, 128)     # multiple of 128 (mask lanes) unless full S
    Ht = _pick_tile(H, ht_pref, 128)     # multiple of 128 (lane-dense output) unless full H

    grid = (B // Bt, H // Ht, S // St)   # S innermost -> reduction axis last

    x_item = jnp.dtype(x.dtype).itemsize
    m_item = jnp.dtype(mask.dtype).itemsize
    needed = (2 * Bt * St * Ht * x_item      # double-buffered x tiles
              + 2 * Bt * St * m_item         # double-buffered mask tiles
              + Bt * Ht * 4                  # resident output accumulator
              + Bt * 128 * 4                 # count scratch (lane-padded)
              + (1 << 20))                   # headroom
    vmem_limit = int(min(max(2 * needed, 32 * 1024 * 1024), 64 * 1024 * 1024))

    return pl.pallas_call(
        _mean_pool_kernel,
        out_shape=jax.ShapeDtypeStruct((B, H), jnp.float32),
        grid_spec=pltpu.PrefetchScalarGridSpec(
            num_scalar_prefetch=0,
            grid=grid,
            in_specs=[
                pl.BlockSpec((Bt, St, Ht), lambda i, j, k: (i, k, j)),
                pl.BlockSpec((Bt, St), lambda i, j, k: (i, k)),  # mask reused across H tiles
            ],
            out_specs=pl.BlockSpec((Bt, Ht), lambda i, j, k: (i, j)),  # S-invariant accumulator
            scratch_shapes=[pltpu.VMEM((Bt, 1), jnp.float32)],
        ),
        compiler_params=pltpu.CompilerParams(
            dimension_semantics=("parallel", "parallel", "arbitrary"),
            vmem_limit_bytes=vmem_limit,
        ),
    )(x, mask)


if __name__ == "__main__":
    key = jax.random.PRNGKey(0)
    k1, _ = jax.random.split(key)

    B, S, H = 2, 8, 32
    last_hidden_state = jax.random.normal(k1, (B, S, H), dtype=jnp.float32)
    # Deterministic attention mask: first few tokens valid, rest padded.
    lengths = jnp.array([5, 3], dtype=jnp.int32)
    attention_mask = (jnp.arange(S)[None, :] < lengths[:, None]).astype(jnp.int32)

    out = mean_pooling(last_hidden_state, attention_mask)
    out = jax.block_until_ready(out)

    # Pure-JAX reference (mirrors the PyTorch MeanPooling math).
    mask_exp = attention_mask[:, :, None].astype(jnp.float32)
    sum_emb = jnp.sum(last_hidden_state * mask_exp, axis=1)
    sum_mask = jnp.maximum(jnp.sum(mask_exp, axis=1), 1e-9)
    ref = sum_emb / sum_mask

    assert out.shape == (B, H)
    assert jnp.allclose(out, ref, atol=1e-5, rtol=1e-5), "mismatch vs reference"

    print("KERNEL_OK")
</pallas_src>

<mosaic_0001>
module attributes {stable_mosaic.version = 11 : i64} {
  func.func @_mean_pool_kernel(%arg0: i32, %arg1: i32, %arg2: i32, %arg3: memref<2x8x32xf32, #tpu.memory_space<vmem>>, %arg4: memref<2x8xi32, #tpu.memory_space<vmem>>, %arg5: memref<2x32xf32, #tpu.memory_space<vmem>>, %arg6: memref<2x1xf32, #tpu.memory_space<vmem>>) attributes {dimension_semantics = [#tpu.dimension_semantics<parallel>, #tpu.dimension_semantics<parallel>, #tpu.dimension_semantics<arbitrary>], iteration_bounds = array<i64: 1, 1, 1>, scalar_prefetch = 0 : i64, scratch_operands = 1 : i64, tpu.core_type = #tpu.core_type<tc>, window_params = [{transform_indices = @transform_0, window_bounds = array<i64: 2, 8, 32>}, {transform_indices = @transform_1, window_bounds = array<i64: 2, 8>}, {transform_indices = @transform_2, window_bounds = array<i64: 2, 32>}]} {
    %c0_i32 = arith.constant 0 : i32
    %0 = arith.cmpi eq, %arg2, %c0_i32 : i32
    %1 = arith.extui %0 : i1 to i32
    %c0_i32_0 = arith.constant 0 : i32
    %2 = arith.cmpi ne, %1, %c0_i32_0 : i32
    scf.if %2 {
      %cst_16 = arith.constant 0.000000e+00 : f32
      %21 = vector.broadcast %cst_16 : f32 to vector<2x32xf32>
      %c0_17 = arith.constant 0 : index
      %c0_18 = arith.constant 0 : index
      %22 = vector.load %arg5[%c0_17, %c0_18] : memref<2x32xf32, #tpu.memory_space<vmem>>, vector<2x32xf32>
      tpu.vector_store %arg5[%c0_17, %c0_18], %21 {strides = array<i32>} : memref<2x32xf32, #tpu.memory_space<vmem>>, vector<2x32xf32>,
      %cst_19 = arith.constant 0.000000e+00 : f32
      %23 = vector.broadcast %cst_19 : f32 to vector<2x1xf32>
      %c0_20 = arith.constant 0 : index
      %c0_21 = arith.constant 0 : index
      %24 = vector.load %arg6[%c0_20, %c0_21] : memref<2x1xf32, #tpu.memory_space<vmem>>, vector<2x1xf32>
      tpu.vector_store %arg6[%c0_20, %c0_21], %23 {strides = array<i32>} : memref<2x1xf32, #tpu.memory_space<vmem>>, vector<2x1xf32>,
    } else {
    }
    %c0 = arith.constant 0 : index
    %c0_1 = arith.constant 0 : index
    %c0_2 = arith.constant 0 : index
    %3 = vector.load %arg3[%c0, %c0_1, %c0_2] : memref<2x8x32xf32, #tpu.memory_space<vmem>>, vector<2x8x32xf32>
    %c0_3 = arith.constant 0 : index
    %c0_4 = arith.constant 0 : index
    %4 = vector.load %arg4[%c0_3, %c0_4] : memref<2x8xi32, #tpu.memory_space<vmem>>, vector<2x8xi32>
    %5 = arith.sitofp %4 : vector<2x8xi32> to vector<2x8xf32>
    %c0_5 = arith.constant 0 : index
    %c0_6 = arith.constant 0 : index
    %6 = vector.load %arg5[%c0_5, %c0_6] : memref<2x32xf32, #tpu.memory_space<vmem>>, vector<2x32xf32>
    %7 = vector.shape_cast %5 : vector<2x8xf32> to vector<2x8x1xf32>
    %8 = vector.broadcast %7 : vector<2x8x1xf32> to vector<2x8x32xf32>
    %9 = arith.mulf %3, %8 : vector<2x8x32xf32>
    %cst = arith.constant dense<0.000000e+00> : vector<2x32xf32>
    %10 = vector.multi_reduction <add>, %9, %cst [1] : vector<2x8x32xf32> to vector<2x32xf32>
    %11 = arith.addf %6, %10 : vector<2x32xf32>
    %c0_7 = arith.constant 0 : index
    %c0_8 = arith.constant 0 : index
    %12 = vector.load %arg5[%c0_7, %c0_8] : memref<2x32xf32, #tpu.memory_space<vmem>>, vector<2x32xf32>
    tpu.vector_store %arg5[%c0_7, %c0_8], %11 {strides = array<i32>} : memref<2x32xf32, #tpu.memory_space<vmem>>, vector<2x32xf32>,
    %c0_9 = arith.constant 0 : index
    %c0_10 = arith.constant 0 : index
    %13 = vector.load %arg6[%c0_9, %c0_10] : memref<2x1xf32, #tpu.memory_space<vmem>>, vector<2x1xf32>
    %cst_11 = arith.constant dense<0.000000e+00> : vector<2xf32>
    %14 = vector.multi_reduction <add>, %5, %cst_11 [1] : vector<2x8xf32> to vector<2xf32>
    %15 = vector.shape_cast %14 : vector<2xf32> to vector<2x1xf32>
    %16 = arith.addf %13, %15 : vector<2x1xf32>
    %c0_12 = arith.constant 0 : index
    %c0_13 = arith.constant 0 : index
    %17 = vector.load %arg6[%c0_12, %c0_13] : memref<2x1xf32, #tpu.memory_space<vmem>>, vector<2x1xf32>
    tpu.vector_store %arg6[%c0_12, %c0_13], %16 {strides = array<i32>} : memref<2x1xf32, #tpu.memory_space<vmem>>, vector<2x1xf32>,
    %c0_i32_14 = arith.constant 0 : i32
    %18 = arith.cmpi eq, %arg2, %c0_i32_14 : i32
    %19 = arith.extui %18 : i1 to i32
    %c0_i32_15 = arith.constant 0 : i32
    %20 = arith.cmpi ne, %19, %c0_i32_15 : i32
    scf.if %20 {
      %c0_16 = arith.constant 0 : index
      %c0_17 = arith.constant 0 : index
      %21 = vector.load %arg6[%c0_16, %c0_17] : memref<2x1xf32, #tpu.memory_space<vmem>>, vector<2x1xf32>
      %cst_18 = arith.constant 9.99999971E-10 : f32
      %22 = vector.broadcast %cst_18 : f32 to vector<2x1xf32>
      %23 = arith.maximumf %21, %22 : vector<2x1xf32>
      %c0_19 = arith.constant 0 : index
      %c0_20 = arith.constant 0 : index
      %24 = vector.load %arg5[%c0_19, %c0_20] : memref<2x32xf32, #tpu.memory_space<vmem>>, vector<2x32xf32>
      %25 = vector.broadcast %23 : vector<2x1xf32> to vector<2x32xf32>
      %26 = arith.divf %24, %25 : vector<2x32xf32>
      %c0_21 = arith.constant 0 : index
      %c0_22 = arith.constant 0 : index
      %27 = vector.load %arg5[%c0_21, %c0_22] : memref<2x32xf32, #tpu.memory_space<vmem>>, vector<2x32xf32>
      tpu.vector_store %arg5[%c0_21, %c0_22], %26 {strides = array<i32>} : memref<2x32xf32, #tpu.memory_space<vmem>>, vector<2x32xf32>,
    } else {
    }
    return
  }
  func.func @transform_0(%arg0: i32, %arg1: i32, %arg2: i32) -> (i32, i32, i32) {
    %c0_i32 = arith.constant 0 : i32
    return %arg0, %arg2, %arg1 : i32, i32, i32
  }
  func.func @transform_1(%arg0: i32, %arg1: i32, %arg2: i32) -> (i32, i32) {
    %c0_i32 = arith.constant 0 : i32
    return %arg0, %arg2 : i32, i32
  }
  func.func @transform_2(%arg0: i32, %arg1: i32, %arg2: i32) -> (i32, i32) {
    %c0_i32 = arith.constant 0 : i32
    return %arg0, %arg1 : i32, i32
  }
}

</mosaic_0001>

<bundles_post_ra>
// kernel: tpu_custom_call.1
= control target key start
LH: loop header
LB: loop body
LE: loop exit
PB: predicated region body
PF: predicated region fallthrough
CT: control target
= control target key end

     0   :  { %7 = vsyncpa [#allocation4], 0  ;;  %s274_s0 = inlined_call_operand.hbm [shape: f32[2,8,32], index: 0, kind: input, shape index: {}]   ;;  %s275_s1 = inlined_call_operand.hbm [shape: s32[2,8], index: 1, kind: input, shape index: {}]   ;;  %s276_s2 = inlined_call_operand.hbm [shape: f32[2,32], index: 2, kind: output, shape index: {}]  }
   0x1   :  { %8 = vsyncpa [#allocation7], 0 }
   0x2   :  { %9 = vsyncpa [#allocation5], 0  ;;  %s14_s11 = sshll.u32 %s274_s0, 4  ;;  %s238_s12 = smov [#allocation3]   ;;  %s15_s11 = int_to_ptr.hbm [resolvable:$true] %s14_s11 }
   0x3   :  { %s16_s13 = sshll.u32 %s238_s12, 4  ;;  %s28_s16 = sshll.u32 %s275_s1, 4  ;;  %s17_s13 = int_to_ptr.vmem [resolvable:$true] %s16_s13  ;;  %s29_s16 = int_to_ptr.hbm [resolvable:$true] %s28_s16 }
   0x4   :  { %s239_s17 = smov 128   ;;  %s240_s18 = smov 8  }
   0x5   :  { %22 = dma.hbm_to_vmem [thread:$0]  %s15_s11, 256, %s17_s13, [#allocation4], %s239_s17, %s239_s17, %s240_s18  }
   0x6   :  { %s241_s19 = smov [#allocation6]  }
   0x7   :  { %s30_s20 = sshll.u32 %s241_s19, 4  ;;  %s31_s20 = int_to_ptr.vmem [resolvable:$true] %s30_s20 }
   0x8   :  { %33 = dma.hbm_to_vmem [thread:$0]  %s29_s16, 32, %s31_s20, [#allocation7]  }
   0x9   :  { %232 = dma.done.wait [#allocation4], 256  }
   0xa   :  { %233 = vsyncadd [#allocation4], 4294967040 }
   0xb   :  { %234 = dma.done.wait [#allocation7], 32  }
   0xc   :  { %235 = vsyncadd [#allocation7], 4294967264  ;;  %v56_v0 = vlaneseq  ;;  %vm48_vm0 = vcmask 1024   ;;  %v242_v1 = vmov 0.0   ;;  %v52_v3 = vld [vmem:[#allocation6] sm:$0x3] }
   0xd   :  { %49 = vst.msk [vmem:[#allocation2] sm:$0x3] %vm48_vm0, %v242_v1  ;;  %vm95_vm1 = vcmask 58368   ;;  %v53_v4 = vcvt.s32.f32 %v52_v3  ;;  %v243_v8 = vmov 0   ;;  %vm46_vm2 = vcmask 254976   ;;  %v51_v13 = vld [vmem:[#allocation3 + $0x8] sm:$0xff] }
   0xe   :  { %v57_v2 = vshrl.u32 %v56_v0, 7  ;;  %47 = vst.msk [vmem:[#allocation8] sm:$0x3] %vm46_vm2, %v242_v1  ;;  %vm71_vm3 = vcmask 261120   ;;  %v50_v20 = vld [vmem:[#allocation3] sm:$0xff]  ;;  %vm88_vm4 = vcmask 1041409  }
   0xf   :  { %v96_v5 = vsel %vm95_vm1, %v53_v4, 0.0  ;;  %v62_v6 = vperm.slane %v53_v4, 1  ;;  %v55_v7 = vperm.slane %v53_v4, 0  ;;  %s244_s0 = smov [#allocation8]   ;;  %s136_s23 = sshll.u32 %s276_s2, 4  ;;  %s137_s23 = int_to_ptr.hbm [resolvable:$true] %s136_s23 }
  0x10   :  { %155 = vset.pattern.permute.xlu1 %v57_v2  ;;  %154 = vset.pattern.permute.xlu0 %v57_v2  ;;  %s134_s1 = sshll.u32 %s244_s0, 4  ;;  %s135_s1 = int_to_ptr.vmem [resolvable:$true] %s134_s1 }
  0x11   :  { %97 = vadd.xlane.f32.xlu0 %v96_v5 }
  0x14   :  { %v94_v9 = vld [vmem:[#allocation2] sm:$0x3] }
  0x15   :  { %v54_v33 = vld [vmem:[#allocation8] sm:$0x3] }
  0x18   :  { %67 = vperm.xlu1 %155, %v62_v6  }
  0x20   :  { %156 = vset.pattern.permute.xlu1 %v243_v8 }
  0x25   :  { %60 = vperm.xlu0 %154, %v55_v7  }
  0x2d   :  { %157 = vset.pattern.permute.xlu0 %v243_v8 }
  0x84   :  { %v98_v10 = vpop.xlane.xlu0 %97 }
  0x85   :  { %v99_v11 = vadd.f32 %v98_v10, %v94_v9 }
  0x87   :  { %101 = vst.msk [vmem:[#allocation2] sm:$0x3] %vm48_vm0, %v99_v11 }
  0x8a   :  { %v68_v12 = vpop.permute.xlu1 %67 }
  0x8b   :  { %v70_v14 = vmul.f32 %v68_v12, %v51_v13 }
  0x8d   :  { %v79_v15 = vsel %vm71_vm3, %v70_v14, 0.0 }
  0x8e   :  { %v105_v16 = vld [vmem:[#allocation2] sm:$0x3]  ;;  %v80_v18 = vrot.slane %v79_v15, 4 }
  0x8f   :  { %v106_v17 = vmax.f32 %v105_v16, 1e-09 }
  0x90   :  { %v81_v19 = vadd.f32 %v80_v18, %v79_v15 }
  0x91   :  { %110 = vperm.xlu1 %156, %v106_v17  }
  0x92   :  { %v82_v21 = vrot.slane %v81_v19, 2 }
  0x94   :  { %v83_v25 = vadd.f32 %v82_v21, %v81_v19 }
  0x96   :  { %v84_v28 = vrot.slane %v83_v25, 1 }
  0x97   :  { %v61_v22 = vpop.permute.xlu0 %60 }
  0x98   :  { %v69_v23 = vmul.f32 %v61_v22, %v50_v20  ;;  %v85_v31 = vadd.f32 %v84_v28, %v83_v25 }
  0x9a   :  { %v72_v24 = vsel %vm71_vm3, %v69_v23, 0.0 }
  0x9b   :  { %v73_v26 = vrot.slane %v72_v24, 4 }
  0x9d   :  { %v74_v27 = vadd.f32 %v73_v26, %v72_v24 }
  0x9f   :  { %v75_v29 = vrot.slane %v74_v27, 2 }
  0xa1   :  { %v76_v30 = vadd.f32 %v75_v29, %v74_v27 }
  0xa3   :  { %v77_v32 = vrot.slane %v76_v30, 1 }
  0xa5   :  { %v78_v34 = vadd.f32 %v77_v32, %v76_v30 }
  0xa7   :  { %v89_v35 = vsel %vm88_vm4, %v85_v31, %v78_v34 }
  0xa8   :  { %v91_v36 = vadd.f32 %v89_v35, %v54_v33 }
  0xaa   :  { %93 = vst.msk [vmem:[#allocation8] sm:$0x3] %vm46_vm2, %v91_v36 }
  0xb1   :  { %v107_v47 = vld [vmem:[#allocation8] sm:$0x3] }
 0x103   :  { %v111_v37 = vpop.permute.xlu1 %110 }
 0x104   :  { %158 = vrcp.f32 %v111_v37  ;;  %v124_v41 = vand.u32 2147483648, %v111_v37  ;;  %v122_v43 = vand.u32 2147483647, %v111_v37  ;;  %vm118_vm6 = vweird.f32 %v111_v37 }
 0x106   :  { %v125_v45 = vor.u32 1.1754944e-38, %v124_v41  ;;  %vm123_vm8 = vcmp.eq.f32.partialorder %v122_v43, 8.507059e+37 }
 0x10a   :  { %v159_v38 = vpop.eup %158 }
 0x10b   :  { %v114_v39 = vmul.f32 %v159_v38, %v111_v37  ;;  %vm119_vm5 = vweird.f32 %v159_v38 }
 0x10c   :  { %vm120_vm7 = vmor %vm118_vm6, %vm119_vm5 }
 0x10d   :  { %v115_v40 = vsub.f32 1.0, %v114_v39 }
 0x10f   :  { %v116_v42 = vmul.f32 %v159_v38, %v115_v40 }
 0x111   :  { %v117_v44 = vadd.f32 %v159_v38, %v116_v42 }
 0x113   :  { %v121_v46 = vsel %vm120_vm7, %v159_v38, %v117_v44 }
 0x114   :  { %v126_v48 = vsel %vm123_vm8, %v125_v45, %v121_v46 }
 0x115   :  { %v127_v49 = vmul.f32 %v126_v48, %v107_v47 }
 0x117   :  { %128 = vst.msk [vmem:[#allocation8] sm:$0x3] %vm46_vm2, %v127_v49 }
 0x118   :  { %139 = dma.vmem_to_hbm [thread:$0]  %s135_s1, 32, %s137_s23, [#allocation5]  }
 0x119   :  { %236 = dma.done.wait [#allocation5], 32  }
 0x11a   :  { %237 = vsyncadd [#allocation5], 4294967264 }
 0x11b   :  { %144 = vsyncpa [#allocation4], 1 }
 0x11c   :  { %145 = vsyncpa [#allocation7], 1 }
 0x11d   :  { %146 = vsyncpa [#allocation5], 1 }

</bundles_post_ra>
